<compile_context>
chip_gen: v7x
topology: tpu7x:2x2x1
jax: 0.10.0
libtpu: 0.0.40
codegen_flags: <defaults>
</compile_context>

<pallas_src>
import functools
import math

import jax
import jax.numpy as jnp
from jax.experimental import pallas as pl
from jax.experimental.pallas import tpu as pltpu

_VMEM_BUDGET = 20 * 1024 * 1024  # 2x-buffered input + f32 accumulator headroom


def _gp_ssq_kernel_3d(g_ref, o_ref, acc_ref, *, n_rows, tile_r,
                      tiles_per_shard, need_mask):
    """Per-sample sum-of-squares over (B, tile_r, 128) sublane-packed blocks."""
    s = pl.program_id(0)              # shard axis (parallel across TCs)
    j = pl.program_id(1)              # row-tile within shard (reduction axis)

    @pl.when(j == 0)
    def _init():
        acc_ref[...] = jnp.zeros_like(acc_ref)

    g = g_ref[...].astype(jnp.float32)        # cast in-vreg; HBM read is native dtype
    if need_mask:
        row = jax.lax.broadcasted_iota(jnp.int32, g.shape, 1)
        row = row + (s * tiles_per_shard + j) * tile_r
        g = jnp.where(row < n_rows, g, 0.0)   # zero ragged / duplicated tail rows
    acc_ref[...] += g * g                      # pure VPU; no per-step XLU reduce

    @pl.when(j == pl.num_programs(1) - 1)
    def _finalize():
        ssq = jnp.sum(acc_ref[...], axis=1)                 # (B, 128)
        o_ref[...] = jnp.sum(ssq, axis=1, keepdims=True)    # (B, 1) shard partial


def _gp_ssq_kernel_2d(g_ref, o_ref, acc_ref, *, n_cols, tile_d, need_mask):
    """Fallback for D % 128 != 0: (B, tile_d) blocks with lane-masked tail."""
    j = pl.program_id(0)

    @pl.when(j == 0)
    def _init():
        acc_ref[...] = jnp.zeros_like(acc_ref)

    g = g_ref[...].astype(jnp.float32)
    if need_mask:
        col = jax.lax.broadcasted_iota(jnp.int32, g.shape, 1) + j * tile_d
        g = jnp.where(col < n_cols, g, 0.0)
    acc_ref[...] += g * g

    @pl.when(j == pl.num_programs(0) - 1)
    def _finalize():
        o_ref[...] = jnp.sum(acc_ref[...], axis=1, keepdims=True)  # (B, 1)


def _per_sample_ssq(dydx):
    """(B,) f32 sum of squares of the flattened per-sample gradient (Pallas)."""
    B = dydx.shape[0]
    D = math.prod(dydx.shape[1:])
    itemsize = dydx.dtype.itemsize
    bytes_per_elem = 2 * itemsize + 4       # double-buffered input + f32 accumulator

    if D % 128 == 0:
        # Sublane-packed view: each sample is (R, 128); contiguous reshape (no pad).
        R = D // 128
        g = dydx.reshape(B, R, 128)
        tile_r = _VMEM_BUDGET // max(B * 128 * bytes_per_elem, 1)
        tile_r = max(8, (tile_r // 8) * 8)
        if tile_r >= R:
            tile_r = R                       # single tile covers all rows
        n_tiles = pl.cdiv(R, tile_r)
        n_shards = 2 if n_tiles >= 2 else 1  # 2 TCs on v7x; harmless on v5e/v6e
        tiles_per_shard = pl.cdiv(n_tiles, n_shards)
        need_mask = (n_shards * tiles_per_shard * tile_r) != R

        def in_map(s, j):
            idx = jnp.minimum(s * tiles_per_shard + j, n_tiles - 1)
            return (0, idx, 0)

        kernel = functools.partial(
            _gp_ssq_kernel_3d, n_rows=R, tile_r=tile_r,
            tiles_per_shard=tiles_per_shard, need_mask=need_mask)
        grid = (n_shards, tiles_per_shard)
        in_specs = [pl.BlockSpec((B, tile_r, 128), in_map)]
        out_specs = pl.BlockSpec((None, B, 1), lambda s, j: (s, 0, 0))
        scratch = [pltpu.VMEM((B, tile_r, 128), jnp.float32)]
        semantics = ("parallel", "arbitrary")
    else:
        # Ragged D: keep the (B, D) view, mask tail lanes in-kernel (no HBM pad).
        g = dydx.reshape(B, D)
        B_pad = pl.cdiv(B, 8) * 8            # sublane padding of the VMEM blocks
        tile_d = _VMEM_BUDGET // max(B_pad * bytes_per_elem, 1)
        tile_d = max(128, (tile_d // 128) * 128)
        tile_d = min(tile_d, pl.cdiv(D, 128) * 128)
        n_tiles = pl.cdiv(D, tile_d)
        n_shards = 1
        need_mask = (n_tiles * tile_d) != D

        kernel = functools.partial(
            _gp_ssq_kernel_2d, n_cols=D, tile_d=tile_d, need_mask=need_mask)
        grid = (n_tiles,)
        in_specs = [pl.BlockSpec((B, tile_d), lambda j: (0, j))]
        out_specs = pl.BlockSpec((None, B, 1), lambda j: (0, 0, 0))
        scratch = [pltpu.VMEM((B, tile_d), jnp.float32)]
        semantics = ("arbitrary",)

    partials = pl.pallas_call(
        kernel,
        out_shape=jax.ShapeDtypeStruct((n_shards, B, 1), jnp.float32),
        grid_spec=pltpu.PrefetchScalarGridSpec(
            num_scalar_prefetch=0,
            grid=grid,
            in_specs=in_specs,
            out_specs=out_specs,
            scratch_shapes=scratch,
        ),
        compiler_params=pltpu.CompilerParams(
            dimension_semantics=semantics,
            vmem_limit_bytes=32 * 1024 * 1024,   # safe on v5e/v6e/v7x scoped VMEM
        ),
        cost_estimate=pl.CostEstimate(
            flops=2 * B * D,
            transcendentals=0,
            bytes_accessed=B * D * itemsize + n_shards * B * 4,
        ),
    )(g)
    return jnp.sum(partials, axis=0)[:, 0]       # combine shard partials -> (B,)


def gradient_penalty_loss(dydx):
    """mean((||dydx_b||_2 - 1)^2) — the GradientPaneltyLoss reduction."""
    ssq = _per_sample_ssq(dydx)
    norm = jnp.sqrt(ssq)
    return jnp.mean((norm - 1.0) ** 2)


if __name__ == "__main__":
    B, C, H, W = 2, 4, 16, 16
    key = jax.random.PRNGKey(0)
    kx, kw = jax.random.split(key)
    x = jax.random.normal(kx, (B, C, H, W), dtype=jnp.float32)

    D = C * H * W
    w = 0.05 * jax.random.normal(kw, (D, 1), dtype=jnp.float32)

    def critic(xx):                                   # stand-in network producing y
        return jnp.tanh(xx.reshape(xx.shape[0], -1) @ w)   # y: (B, 1)

    # TODO(synk): torch.autograd.grad(y, x, grad_outputs=ones_like(y)) has no
    # Pallas equivalent (it differentiates the y<-x graph); the exact JAX
    # equivalent is a VJP with a ones cotangent, computed here in the wrapper.
    y, vjp_fn = jax.vjp(critic, x)
    dydx = vjp_fn(jnp.ones_like(y))[0]                # (B, C, H, W)

    loss = jax.block_until_ready(gradient_penalty_loss(dydx))

    # Pure-JAX reference check.
    g_ref = dydx.reshape(B, -1).astype(jnp.float32)
    ref = jnp.mean((jnp.sqrt(jnp.sum(g_ref * g_ref, axis=1)) - 1.0) ** 2)
    ref = jax.block_until_ready(ref)

    assert loss.shape == (), loss.shape
    assert jnp.allclose(loss, ref, atol=1e-5, rtol=1e-5), (float(loss), float(ref))
    print("KERNEL_OK")
</pallas_src>

<mosaic_0001>
module attributes {stable_mosaic.version = 11 : i64} {
  func.func @_gp_ssq_kernel_3d(%arg0: i32, %arg1: i32, %arg2: memref<2x8x128xf32, #tpu.memory_space<vmem>>, %arg3: memref<1x2x1xf32, #tpu.memory_space<vmem>>, %arg4: memref<2x8x128xf32, #tpu.memory_space<vmem>>) attributes {dimension_semantics = [#tpu.dimension_semantics<parallel>, #tpu.dimension_semantics<arbitrary>], iteration_bounds = array<i64: 1, 1>, scalar_prefetch = 0 : i64, scratch_operands = 1 : i64, tpu.core_type = #tpu.core_type<tc>, window_params = [{transform_indices = @transform_0, window_bounds = array<i64: 2, 8, 128>}, {transform_indices = @transform_1, window_bounds = array<i64: 1, 2, 1>}]} {
    %c0_i32 = arith.constant 0 : i32
    %0 = arith.cmpi eq, %arg1, %c0_i32 : i32
    %1 = arith.extui %0 : i1 to i32
    %c0_i32_0 = arith.constant 0 : i32
    %2 = arith.cmpi ne, %1, %c0_i32_0 : i32
    scf.if %2 {
      %cst = arith.constant 0.000000e+00 : f32
      %11 = vector.broadcast %cst : f32 to vector<2x8x128xf32>
      %c0_11 = arith.constant 0 : index
      %c0_12 = arith.constant 0 : index
      %c0_13 = arith.constant 0 : index
      %12 = vector.load %arg4[%c0_11, %c0_12, %c0_13] : memref<2x8x128xf32, #tpu.memory_space<vmem>>, vector<2x8x128xf32>
      tpu.vector_store %arg4[%c0_11, %c0_12, %c0_13], %11 {strides = array<i32>} : memref<2x8x128xf32, #tpu.memory_space<vmem>>, vector<2x8x128xf32>,
    } else {
    }
    %c0 = arith.constant 0 : index
    %c0_1 = arith.constant 0 : index
    %c0_2 = arith.constant 0 : index
    %3 = vector.load %arg2[%c0, %c0_1, %c0_2] : memref<2x8x128xf32, #tpu.memory_space<vmem>>, vector<2x8x128xf32>
    %c0_3 = arith.constant 0 : index
    %c0_4 = arith.constant 0 : index
    %c0_5 = arith.constant 0 : index
    %4 = vector.load %arg4[%c0_3, %c0_4, %c0_5] : memref<2x8x128xf32, #tpu.memory_space<vmem>>, vector<2x8x128xf32>
    %5 = arith.mulf %3, %3 : vector<2x8x128xf32>
    %6 = arith.addf %4, %5 : vector<2x8x128xf32>
    %c0_6 = arith.constant 0 : index
    %c0_7 = arith.constant 0 : index
    %c0_8 = arith.constant 0 : index
    %7 = vector.load %arg4[%c0_6, %c0_7, %c0_8] : memref<2x8x128xf32, #tpu.memory_space<vmem>>, vector<2x8x128xf32>
    tpu.vector_store %arg4[%c0_6, %c0_7, %c0_8], %6 {strides = array<i32>} : memref<2x8x128xf32, #tpu.memory_space<vmem>>, vector<2x8x128xf32>,
    %c0_i32_9 = arith.constant 0 : i32
    %8 = arith.cmpi eq, %arg1, %c0_i32_9 : i32
    %9 = arith.extui %8 : i1 to i32
    %c0_i32_10 = arith.constant 0 : i32
    %10 = arith.cmpi ne, %9, %c0_i32_10 : i32
    scf.if %10 {
      %c0_11 = arith.constant 0 : index
      %c0_12 = arith.constant 0 : index
      %c0_13 = arith.constant 0 : index
      %11 = vector.load %arg4[%c0_11, %c0_12, %c0_13] : memref<2x8x128xf32, #tpu.memory_space<vmem>>, vector<2x8x128xf32>
      %cst = arith.constant dense<0.000000e+00> : vector<2x128xf32>
      %12 = vector.multi_reduction <add>, %11, %cst [1] : vector<2x8x128xf32> to vector<2x128xf32>
      %cst_14 = arith.constant dense<0.000000e+00> : vector<2xf32>
      %13 = vector.multi_reduction <add>, %12, %cst_14 [1] : vector<2x128xf32> to vector<2xf32>
      %14 = vector.shape_cast %13 : vector<2xf32> to vector<2x1xf32>
      %c0_15 = arith.constant 0 : index
      %c0_16 = arith.constant 0 : index
      %c0_17 = arith.constant 0 : index
      %15 = vector.load %arg3[%c0_15, %c0_16, %c0_17] : memref<1x2x1xf32, #tpu.memory_space<vmem>>, vector<1x2x1xf32>
      %16 = vector.shape_cast %15 : vector<1x2x1xf32> to vector<2x1xf32>
      %17 = vector.shape_cast %14 : vector<2x1xf32> to vector<1x2x1xf32>
      tpu.vector_store %arg3[%c0_15, %c0_16, %c0_17], %17 {strides = array<i32>} : memref<1x2x1xf32, #tpu.memory_space<vmem>>, vector<1x2x1xf32>,
    } else {
    }
    return
  }
  func.func @transform_0(%arg0: i32, %arg1: i32) -> (i32, i32, i32) {
    %c1_i32 = arith.constant 1 : i32
    %0 = arith.muli %arg0, %c1_i32 : i32
    %1 = arith.addi %0, %arg1 : i32
    %c0_i32 = arith.constant 0 : i32
    %2 = arith.minsi %1, %c0_i32 : i32
    %c0_i32_0 = arith.constant 0 : i32
    %c0_i32_1 = arith.constant 0 : i32
    %c0_i32_2 = arith.constant 0 : i32
    return %c0_i32_0, %2, %c0_i32_1 : i32, i32, i32
  }
  func.func @transform_1(%arg0: i32, %arg1: i32) -> (i32, i32, i32) {
    %c0_i32 = arith.constant 0 : i32
    %c0_i32_0 = arith.constant 0 : i32
    %c0_i32_1 = arith.constant 0 : i32
    return %arg0, %c0_i32, %c0_i32_0 : i32, i32, i32
  }
}

</mosaic_0001>

<bundles_post_ra>
// kernel: tpu_custom_call.1
= control target key start
LH: loop header
LB: loop body
LE: loop exit
PB: predicated region body
PF: predicated region fallthrough
CT: control target
= control target key end

     0   :  { %6 = vsyncpa [#allocation4], 0  ;;  %s108_s6 = smov [#allocation3]   ;;  %s136_s0 = inlined_call_operand.hbm [shape: f32[2,8,128], index: 0, kind: input, shape index: {}]   ;;  %s137_s1 = inlined_call_operand.vmem [shape: f32[1,2,1], index: 1, kind: output, shape index: {}]  }
   0x1   :  { %s17_s7 = sshll.u32 %s108_s6, 4  ;;  %s84_s10 = scalar_lea.hbm %s136_s0, 256  ;;  %s18_s7 = int_to_ptr.vmem [resolvable:$true] %s17_s7 }
   0x2   :  { %p85_p0 = scmp.ne.s32.totalorder %s136_s0, %s84_s10  ;;  %p88_p1 = scmp.lt.u32.totalorder %s84_s10, %s136_s0 }
   0x4   :  { %p90_p2 = pnand %p88_p1, %p85_p0 }
   0x6   :  { %93 = shalt.err (!%p90_p2)
}
   0x7   :  { %s94_s15 = scalar_lea.vmem %s18_s7, 256  ;;  %p99_p4 = scmp.lt.s32.totalorder %s18_s7, %s18_s7 }
   0x8   :  { %p95_p3 = scmp.ne.s32.totalorder %s18_s7, %s94_s15  ;;  %p100_p5 = scmp.lt.s32.totalorder %s94_s15, %s94_s15 }
   0xa   :  { %p101_p6 = por %p100_p5, %p99_p4 }
   0xc   :  { %p102_p7 = pnand %p101_p6, %p95_p3 }
   0xe   :  { %105 = shalt.err (!%p102_p7)
}
   0xf   :  { %s109_s16 = smov 128   ;;  %s110_s17 = smov 8  }
  0x10   :  { %23 = dma.hbm_to_vmem [thread:$0]  %s136_s0, 256, %s18_s7, [#allocation4], %s109_s16, %s109_s16, %s110_s17  }
  0x11   :  { %106 = dma.done.wait [#allocation4], 256  }
  0x12   :  { %107 = vsyncadd [#allocation4], 4294967040  ;;  %v36_v0 = vld [vmem:[#allocation3] sm:$0xff]  ;;  %v37_v1 = vld [vmem:[#allocation3 + $0x8] sm:$0xff]  ;;  %vm65_vm0 = vcmask 1041409   ;;  %vm68_vm1 = vcmask 1041408  }
  0x13   :  { %v40_v2 = vmul.f32 %v36_v0, %v36_v0  ;;  %v41_v3 = vmul.f32 %v37_v1, %v37_v1  ;;  %vm72_vm2 = vcmask 1024  }
  0x15   :  { %v51_v4 = vrot.slane %v40_v2, 4  ;;  %v57_v5 = vrot.slane %v41_v3, 4 }
  0x17   :  { %v52_v6 = vadd.f32 %v51_v4, %v40_v2  ;;  %v58_v7 = vadd.f32 %v57_v5, %v41_v3 }
  0x19   :  { %v53_v8 = vrot.slane %v52_v6, 2  ;;  %v59_v9 = vrot.slane %v58_v7, 2 }
  0x1b   :  { %v54_v10 = vadd.f32 %v53_v8, %v52_v6  ;;  %v60_v11 = vadd.f32 %v59_v9, %v58_v7 }
  0x1d   :  { %v55_v12 = vrot.slane %v54_v10, 1  ;;  %v61_v13 = vrot.slane %v60_v11, 1 }
  0x1f   :  { %v56_v14 = vadd.f32 %v55_v12, %v54_v10  ;;  %v62_v15 = vadd.f32 %v61_v13, %v60_v11 }
  0x21   :  { %v66_v16 = vsel %vm65_vm0, %v62_v15, %v56_v14 }
  0x22   :  { %v69_v17 = vsel %vm68_vm1, %v66_v16, 0.0 }
  0x23   :  { %70 = vadd.xlane.f32.xlu0 %v69_v17 }
  0xb0   :  { %v71_v18 = vpop.xlane.xlu0 %70 }
  0xb1   :  { %73 = vst.msk [vmem:[%s137_s1] sm:$0x3] %vm72_vm2, %v71_v18 }
  0xb2   :  { %78 = vsyncpa [#allocation4], 1 }

</bundles_post_ra>
